<compile_context>
chip_gen: v7x
topology: tpu7x:2x2x1
jax: 0.10.0
libtpu: 0.0.40
codegen_flags: <defaults>
</compile_context>

<pallas_src>
import functools

import jax
import jax.numpy as jnp
from jax.experimental import pallas as pl
from jax.experimental.pallas import tpu as pltpu

XENT = 0.1
COS_EPS = 1e-8     # eps clamp inside cosine-similarity denominator
NORM_EPS = 1e-12   # eps used by F.normalize

_OUT_SUB, _OUT_LANE = 8, 128   # aligned, lane-dense per-chunk output slab


def cosine_loss_kernel(x_ref, labels_ref, out_ref, acc_ref, *,
                       batch, tile_rows, xent, bf16_exp, need_mask):
    p = pl.program_id(0)        # parallel super-chunk (megacore axis)
    i = pl.program_id(1)        # reduction step within the chunk

    @pl.when(i == 0)
    def _init():
        acc_ref[...] = jnp.zeros_like(acc_ref)

    x = x_ref[...].astype(jnp.float32)                 # [TB, C] (cast in-kernel)
    labels = labels_ref[...]                           # [TB, 1] int32
    tb, c = x.shape

    # one-hot via iota compare (no gather)
    col = jax.lax.broadcasted_iota(jnp.int32, (tb, c), 1)
    onehot = col == labels                             # bool [TB, C]

    # per-row dot with one-hot == picked logit; squared norm
    dot = jnp.sum(jnp.where(onehot, x, 0.0), axis=-1, keepdims=True)   # [TB, 1]
    norm = jnp.sqrt(jnp.sum(x * x, axis=-1, keepdims=True))            # [TB, 1]

    # per-row reciprocals (EUP); turns [TB, C] divides into cheap multiplies
    inv_cos = pl.reciprocal(jnp.maximum(norm, COS_EPS))                # [TB, 1]
    inv_nrm = pl.reciprocal(jnp.maximum(norm, NORM_EPS))               # [TB, 1]

    # cosine-embedding term (||onehot|| == 1)
    cos = dot * inv_cos                                                # [TB, 1]

    # Cross-entropy on L2-normalized logits.  Normalized values lie in [-1, 1]
    # so log-sum-exp needs no max-shift (re-add it if normalization changes).
    # Optionally run exp in bf16 (doubles EUP throughput on v6e/v7x); the sum
    # and log stay in f32.  The exp chain is kept as one expression so no
    # extra [TB, C] temporary stays live.
    if bf16_exp:
        e = jnp.exp((x * inv_nrm).astype(jnp.bfloat16)).astype(jnp.float32)
    else:
        e = jnp.exp(x * inv_nrm)
    lse = jnp.log(jnp.sum(e, axis=-1, keepdims=True))                  # [TB, 1]
    picked = dot * inv_nrm                      # == sum(xn * onehot), reuse dot

    # fused per-row loss, then a single sublane reduction per tile
    per_row = (1.0 - cos) + xent * (lse - picked)                      # [TB, 1]

    if need_mask:
        # Rows past the true batch (partial last tile / clamped duplicate
        # blocks) hold garbage that may be NaN/Inf after exp/log -- discard
        # with a select (NOT multiplicative masking, which would propagate NaN).
        virt_blk = p * pl.num_programs(1) + i
        row = virt_blk * tile_rows + jax.lax.broadcasted_iota(jnp.int32, (tb, 1), 0)
        per_row = jnp.where(row < batch, per_row, 0.0)

    acc_ref[...] += jnp.sum(per_row, axis=0, keepdims=True)            # (1, 1)

    @pl.when(i == pl.num_programs(1) - 1)
    def _finish():
        # lane-dense aligned store; every element of the slab = this chunk's sum
        out_ref[...] = jnp.broadcast_to(acc_ref[...], (_OUT_SUB, _OUT_LANE))


def _row_pack(itemsize):
    """Sublane packing: 8 rows (f32), 16 (bf16), 32 (int8)."""
    return max(1, 4 // max(1, itemsize)) * 8


def _vmem_limit_bytes():
    """Per-generation VMEM limit: ~3/4 of physical, clamped to [32, 96] MiB."""
    phys = 64 * 1024 * 1024                       # conservative fallback (v7x per-core)
    try:
        cap = getattr(pltpu.get_tpu_info(), "vmem_capacity_bytes", None)
        if cap:
            phys = int(cap)
    except Exception:
        pass
    # 96 MiB on 128-MiB chips (v5e/v6e), 48 MiB on 64-MiB v7x
    return max(32 * 1024 * 1024, min((phys * 3) // 4, 96 * 1024 * 1024))


def _choose_tile_rows(batch, channels, itemsize, vmem_limit):
    """Batch-tile size: several MiB of logits per tile, sublane-pack aligned."""
    pack = _row_pack(itemsize)
    # Per-row VMEM bytes, conservatively:
    #   2x double-buffered native logits row         : 2*C*itemsize
    #   in-kernel f32 copy of x + one fused temp     : 2*C*4
    #   labels block lane-padded (tb,1)->(tb,128)    : 2*128*4 = 1024 (x2 buffers)
    per_row = 2 * channels * itemsize + 8 * channels + 1024
    budget = (vmem_limit * 2) // 5                # leave >half the limit as headroom
    tb = min(budget // per_row, 8192)             # cap rows/tile (overhead amortized)
    if batch <= tb:
        return batch                              # full-batch block is always legal
    return max(pack, (tb // pack) * pack)


def cosine_loss(logits, target, *, xent=XENT, tile_rows=None,
                num_parallel_chunks=2, bf16_exp=None):
    """logits [B, C] float, target [B] int -> scalar f32 loss (matches PyTorch module)."""
    B, C = logits.shape
    labels2d = target.astype(jnp.int32).reshape(B, 1)

    itemsize = jnp.dtype(logits.dtype).itemsize
    pack = _row_pack(itemsize)
    vmem_limit = _vmem_limit_bytes()

    if tile_rows is None:
        tb = _choose_tile_rows(B, C, itemsize, vmem_limit)
    else:
        tb = min(int(tile_rows), B)
        if tb < B:                                # respect dtype sublane packing
            tb = max(pack, (tb // pack) * pack)

    n_total = pl.cdiv(B, tb)
    P = max(1, int(num_parallel_chunks))
    # If the whole batch fits one tile but multiple TensorCores could be used
    # (v7x megacore), shrink the tile so each chunk gets work.
    if tile_rows is None and P > 1 and n_total < P and B > P * pack:
        tb = min(B, max(pack, pl.cdiv(pl.cdiv(B, P), pack) * pack))
        n_total = pl.cdiv(B, tb)
    P = min(P, n_total)
    n_inner = pl.cdiv(n_total, P)
    need_mask = (P * n_inner * tb) != B           # statically known

    if bf16_exp is None:
        # Only default-on when inputs are already bf16, so f32 callers keep
        # full accuracy.  (Pure EUP-throughput win on v6e/v7x.)
        bf16_exp = logits.dtype == jnp.bfloat16

    last_blk = n_total - 1

    def row_block(p, i):
        # virtual block p*n_inner+i; clamp so trailing duplicate blocks stay
        # in bounds (their rows are discarded by the in-kernel mask).
        return (jnp.minimum(p * n_inner + i, last_blk), 0)

    out = pl.pallas_call(
        functools.partial(cosine_loss_kernel, batch=B, tile_rows=tb, xent=xent,
                          bf16_exp=bool(bf16_exp), need_mask=need_mask),
        out_shape=jax.ShapeDtypeStruct((P * _OUT_SUB, _OUT_LANE), jnp.float32),
        grid=(P, n_inner),
        in_specs=[
            pl.BlockSpec((tb, C), row_block),     # logits tile (native dtype)
            pl.BlockSpec((tb, 1), row_block),     # labels tile
        ],
        out_specs=pl.BlockSpec((_OUT_SUB, _OUT_LANE), lambda p, i: (p, 0)),
        scratch_shapes=[pltpu.VMEM((1, 1), jnp.float32)],   # running-sum accumulator
        compiler_params=pltpu.CompilerParams(
            dimension_semantics=("parallel", "arbitrary"),
            vmem_limit_bytes=int(vmem_limit),
        ),
    )(logits, labels2d)

    # one representative element per chunk slab -> mean over the true batch
    return jnp.sum(out[0::_OUT_SUB, 0]) / B


def cosine_loss_ref(logits, target, xent=XENT):
    """Pure-JAX reference mirroring the PyTorch module."""
    x = logits.astype(jnp.float32)
    C = x.shape[-1]
    onehot = jax.nn.one_hot(target, C, dtype=jnp.float32)
    norm = jnp.sqrt(jnp.sum(x * x, axis=-1, keepdims=True))
    dot = jnp.sum(x * onehot, axis=-1, keepdims=True)
    cos = dot / jnp.maximum(norm, COS_EPS)
    cosine_l = jnp.mean(1.0 - cos)
    xn = x / jnp.maximum(norm, NORM_EPS)
    logp = jax.nn.log_softmax(xn, axis=-1)
    cent = -jnp.mean(jnp.sum(logp * onehot, axis=-1))
    return cosine_l + xent * cent


if __name__ == "__main__":
    key = jax.random.PRNGKey(0)

    # Case 1: small f32, single grid step (full-batch tile, one chunk).
    k1, k2, key = jax.random.split(key, 3)
    B, C = 16, 32
    x1 = jax.random.normal(k1, (B, C), dtype=jnp.float32)
    t1 = jax.random.randint(k2, (B,), 0, C, dtype=jnp.int32)
    got1 = cosine_loss(x1, t1)
    jax.block_until_ready(got1)
    ref1 = cosine_loss_ref(x1, t1)
    assert abs(float(got1) - float(ref1)) < 1e-4, (float(got1), float(ref1))

    # Case 2: f32, uneven batch + forced small tile -> 2 parallel chunks,
    # multi-step accumulation, clamped duplicate block, and row masking.
    k1, k2, key = jax.random.split(key, 3)
    B, C = 20, 48
    x2 = jax.random.normal(k1, (B, C), dtype=jnp.float32)
    t2 = jax.random.randint(k2, (B,), 0, C, dtype=jnp.int32)
    got2 = cosine_loss(x2, t2, tile_rows=8)
    jax.block_until_ready(got2)
    ref2 = cosine_loss_ref(x2, t2)
    assert abs(float(got2) - float(ref2)) < 1e-4, (float(got2), float(ref2))

    # Case 3: bf16 inputs streamed in native dtype; bf16 exp path enabled.
    k1, k2, key = jax.random.split(key, 3)
    B, C = 20, 48
    x3 = jax.random.normal(k1, (B, C), dtype=jnp.float32).astype(jnp.bfloat16)
    t3 = jax.random.randint(k2, (B,), 0, C, dtype=jnp.int32)
    got3 = cosine_loss(x3, t3)
    jax.block_until_ready(got3)
    ref3 = cosine_loss_ref(x3, t3)
    assert abs(float(got3) - float(ref3)) < 1e-3, (float(got3), float(ref3))

    print("KERNEL_OK")
</pallas_src>

<mosaic_0001>
module attributes {stable_mosaic.version = 11 : i64} {
  func.func @cosine_loss_kernel(%arg0: i32, %arg1: i32, %arg2: memref<16x32xf32, #tpu.memory_space<vmem>>, %arg3: memref<16x1xi32, #tpu.memory_space<vmem>>, %arg4: memref<8x128xf32, #tpu.memory_space<vmem>>, %arg5: memref<1x1xf32, #tpu.memory_space<vmem>>) attributes {dimension_semantics = [#tpu.dimension_semantics<parallel>, #tpu.dimension_semantics<arbitrary>], iteration_bounds = array<i64: 1, 1>, scalar_prefetch = 0 : i64, scratch_operands = 1 : i64, tpu.core_type = #tpu.core_type<tc>, window_params = [{transform_indices = @transform_0, window_bounds = array<i64: 16, 32>}, {transform_indices = @transform_1, window_bounds = array<i64: 16, 1>}, {transform_indices = @transform_2, window_bounds = array<i64: 8, 128>}]} {
    %c0_i32 = arith.constant 0 : i32
    %0 = arith.cmpi eq, %arg1, %c0_i32 : i32
    %1 = arith.extui %0 : i1 to i32
    %c0_i32_0 = arith.constant 0 : i32
    %2 = arith.cmpi ne, %1, %c0_i32_0 : i32
    scf.if %2 {
      %cst_18 = arith.constant 0.000000e+00 : f32
      %44 = vector.broadcast %cst_18 : f32 to vector<1x1xf32>
      %c0_19 = arith.constant 0 : index
      %c0_20 = arith.constant 0 : index
      %45 = vector.load %arg5[%c0_19, %c0_20] : memref<1x1xf32, #tpu.memory_space<vmem>>, vector<1x1xf32>
      tpu.vector_store %arg5[%c0_19, %c0_20], %44 {strides = array<i32>} : memref<1x1xf32, #tpu.memory_space<vmem>>, vector<1x1xf32>,
    } else {
    }
    %c0 = arith.constant 0 : index
    %c0_1 = arith.constant 0 : index
    %3 = vector.load %arg2[%c0, %c0_1] : memref<16x32xf32, #tpu.memory_space<vmem>>, vector<16x32xf32>
    %c0_2 = arith.constant 0 : index
    %c0_3 = arith.constant 0 : index
    %4 = vector.load %arg3[%c0_2, %c0_3] : memref<16x1xi32, #tpu.memory_space<vmem>>, vector<16x1xi32>
    %5 = tpu.iota {dimensions = array<i32: 1>} : vector<16x32xi32>
    %6 = vector.broadcast %4 : vector<16x1xi32> to vector<16x32xi32>
    %7 = arith.cmpi eq, %5, %6 : vector<16x32xi32>
    %cst = arith.constant 0.000000e+00 : f32
    %8 = vector.broadcast %cst : f32 to vector<16x32xf32>
    %9 = arith.select %7, %3, %8 : vector<16x32xi1>, vector<16x32xf32>
    %cst_4 = arith.constant dense<0.000000e+00> : vector<16xf32>
    %10 = vector.multi_reduction <add>, %9, %cst_4 [1] : vector<16x32xf32> to vector<16xf32>
    %11 = vector.shape_cast %10 : vector<16xf32> to vector<16x1xf32>
    %12 = arith.mulf %3, %3 : vector<16x32xf32>
    %cst_5 = arith.constant dense<0.000000e+00> : vector<16xf32>
    %13 = vector.multi_reduction <add>, %12, %cst_5 [1] : vector<16x32xf32> to vector<16xf32>
    %14 = vector.shape_cast %13 : vector<16xf32> to vector<16x1xf32>
    %15 = math.sqrt %14 : vector<16x1xf32>
    %cst_6 = arith.constant 9.99999993E-9 : f32
    %16 = vector.broadcast %cst_6 : f32 to vector<16x1xf32>
    %17 = arith.maximumf %15, %16 : vector<16x1xf32>
    %18 = tpu.reciprocal %17 : vector<16x1xf32> -> vector<16x1xf32>
    %cst_7 = arith.constant 9.99999996E-13 : f32
    %19 = vector.broadcast %cst_7 : f32 to vector<16x1xf32>
    %20 = arith.maximumf %15, %19 : vector<16x1xf32>
    %21 = tpu.reciprocal %20 : vector<16x1xf32> -> vector<16x1xf32>
    %22 = arith.mulf %11, %18 : vector<16x1xf32>
    %23 = vector.broadcast %21 : vector<16x1xf32> to vector<16x32xf32>
    %24 = arith.mulf %3, %23 : vector<16x32xf32>
    %25 = math.exp %24 : vector<16x32xf32>
    %cst_8 = arith.constant dense<0.000000e+00> : vector<16xf32>
    %26 = vector.multi_reduction <add>, %25, %cst_8 [1] : vector<16x32xf32> to vector<16xf32>
    %27 = vector.shape_cast %26 : vector<16xf32> to vector<16x1xf32>
    %28 = math.log %27 : vector<16x1xf32>
    %29 = arith.mulf %11, %21 : vector<16x1xf32>
    %cst_9 = arith.constant 1.000000e+00 : f32
    %30 = vector.broadcast %cst_9 : f32 to vector<16x1xf32>
    %31 = arith.subf %30, %22 : vector<16x1xf32>
    %32 = arith.subf %28, %29 : vector<16x1xf32>
    %cst_10 = arith.constant 1.000000e-01 : f32
    %33 = vector.broadcast %cst_10 : f32 to vector<16x1xf32>
    %34 = arith.mulf %33, %32 : vector<16x1xf32>
    %35 = arith.addf %31, %34 : vector<16x1xf32>
    %c0_11 = arith.constant 0 : index
    %c0_12 = arith.constant 0 : index
    %36 = vector.load %arg5[%c0_11, %c0_12] : memref<1x1xf32, #tpu.memory_space<vmem>>, vector<1x1xf32>
    %cst_13 = arith.constant dense<0.000000e+00> : vector<1xf32>
    %37 = vector.multi_reduction <add>, %35, %cst_13 [0] : vector<16x1xf32> to vector<1xf32>
    %38 = vector.shape_cast %37 : vector<1xf32> to vector<1x1xf32>
    %39 = arith.addf %36, %38 : vector<1x1xf32>
    %c0_14 = arith.constant 0 : index
    %c0_15 = arith.constant 0 : index
    %40 = vector.load %arg5[%c0_14, %c0_15] : memref<1x1xf32, #tpu.memory_space<vmem>>, vector<1x1xf32>
    tpu.vector_store %arg5[%c0_14, %c0_15], %39 {strides = array<i32>} : memref<1x1xf32, #tpu.memory_space<vmem>>, vector<1x1xf32>,
    %c0_i32_16 = arith.constant 0 : i32
    %41 = arith.cmpi eq, %arg1, %c0_i32_16 : i32
    %42 = arith.extui %41 : i1 to i32
    %c0_i32_17 = arith.constant 0 : i32
    %43 = arith.cmpi ne, %42, %c0_i32_17 : i32
    scf.if %43 {
      %c0_18 = arith.constant 0 : index
      %c0_19 = arith.constant 0 : index
      %44 = vector.load %arg5[%c0_18, %c0_19] : memref<1x1xf32, #tpu.memory_space<vmem>>, vector<1x1xf32>
      %45 = vector.shape_cast %44 : vector<1x1xf32> to vector<1x1xf32>
      %46 = vector.broadcast %45 : vector<1x1xf32> to vector<8x128xf32>
      %c0_20 = arith.constant 0 : index
      %c0_21 = arith.constant 0 : index
      %47 = vector.load %arg4[%c0_20, %c0_21] : memref<8x128xf32, #tpu.memory_space<vmem>>, vector<8x128xf32>
      tpu.vector_store %arg4[%c0_20, %c0_21], %46 {strides = array<i32>} : memref<8x128xf32, #tpu.memory_space<vmem>>, vector<8x128xf32>,
    } else {
    }
    return
  }
  func.func @transform_0(%arg0: i32, %arg1: i32) -> (i32, i32) {
    %c1_i32 = arith.constant 1 : i32
    %0 = arith.muli %arg0, %c1_i32 : i32
    %1 = arith.addi %0, %arg1 : i32
    %c0_i32 = arith.constant 0 : i32
    %2 = arith.minsi %1, %c0_i32 : i32
    %c0_i32_0 = arith.constant 0 : i32
    %c0_i32_1 = arith.constant 0 : i32
    return %2, %c0_i32_0 : i32, i32
  }
  func.func @transform_1(%arg0: i32, %arg1: i32) -> (i32, i32) {
    %c1_i32 = arith.constant 1 : i32
    %0 = arith.muli %arg0, %c1_i32 : i32
    %1 = arith.addi %0, %arg1 : i32
    %c0_i32 = arith.constant 0 : i32
    %2 = arith.minsi %1, %c0_i32 : i32
    %c0_i32_0 = arith.constant 0 : i32
    %c0_i32_1 = arith.constant 0 : i32
    return %2, %c0_i32_0 : i32, i32
  }
  func.func @transform_2(%arg0: i32, %arg1: i32) -> (i32, i32) {
    %c0_i32 = arith.constant 0 : i32
    %c0_i32_0 = arith.constant 0 : i32
    return %arg0, %c0_i32 : i32, i32
  }
}

</mosaic_0001>

<bundles_post_ra>
// kernel: tpu_custom_call.1
= control target key start
LH: loop header
LB: loop body
LE: loop exit
PB: predicated region body
PF: predicated region fallthrough
CT: control target
= control target key end

     0   :  { %vm98_vm0 = vcmask 261120   ;;  %v264_v5 = vmov 0   ;;  %s314_s0 = inlined_call_operand.vmem [shape: f32[16,32], index: 0, kind: input, shape index: {}]   ;;  %s315_s1 = inlined_call_operand.vmem [shape: s32[16,1], index: 1, kind: input, shape index: {}]   ;;  %s316_s2 = inlined_call_operand.hbm [shape: f32[8,128], index: 2, kind: output, shape index: {}]  }
   0x1   :  { %v82_v0 = vld [vmem:[%s314_s0] sm:$0xff]  ;;  %v83_v1 = vld [vmem:[%s314_s0 + $0x8] sm:$0xff]  ;;  %218 = vset.pattern.permute.xlu1 %v264_v5  ;;  %219 = vset.pattern.permute.xlu0 %v264_v5 }
   0x2   :  { %v84_v2 = vld [vmem:[%s315_s1] sm:$0xff]  ;;  %v105_v3 = vmul.f32 %v82_v0, %v82_v0  ;;  %v106_v4 = vmul.f32 %v83_v1, %v83_v1 }
   0x3   :  { %7 = vsyncpa [#allocation4], 0  ;;  %89 = vperm.xlu1 %218, %v84_v2   ;;  %v85_v7 = vld [vmem:[%s315_s1 + $0x8] sm:$0xff]  ;;  %v86_v27 = vlaneseq  ;;  %vm80_vm7 = vcmask 0   ;;  %v265_v41 = vmov 0.0   ;;  %s266_s0 = smov [#allocation3]  }
   0x4   :  { %v107_v6 = vsel %vm98_vm0, %v105_v3, 0.0  ;;  %v110_v8 = vsel %vm98_vm0, %v106_v4, 0.0  ;;  %81 = vst.msk [vmem:[#allocation2] sm:$0x1] %vm80_vm7, %v265_v41  ;;  %s194_s1 = sshll.u32 %s266_s0, 4  ;;  %s195_s1 = int_to_ptr.vmem [resolvable:$true] %s194_s1 }
   0x5   :  { %108 = vadd.xlane.f32.xlu0 %v107_v6  ;;  %v87_v31 = vand.u32 127, %v86_v27  ;;  %s240_s17 = scalar_lea.vmem %s195_s1, 128  ;;  %p245_p1 = scmp.lt.s32.totalorder %s195_s1, %s195_s1 }
   0x6   :  { %p241_p0 = scmp.ne.s32.totalorder %s195_s1, %s240_s17  ;;  %p246_p2 = scmp.lt.s32.totalorder %s240_s17, %s240_s17 }
   0x7   :  { %92 = vperm.xlu1 %218, %v85_v7  }
   0x8   :  { %p247_p3 = por %p246_p2, %p245_p1 }
   0x9   :  { %111 = vadd.xlane.f32.xlu0 %v110_v8 }
   0xa   :  { %p248_p4 = pnand %p247_p3, %p241_p0 }
   0xb   :  { %v163_v8 = vld [vmem:[#allocation2] sm:$0x1] }
  0x82   :  { %v90_v29 = vpop.permute.xlu1 %89 }
  0x83   :  { %vm94_vm5 = vcmp.eq.s32.totalorder %v87_v31, %v90_v29 }
  0x84   :  { %v96_v34 = vsel %vm94_vm5, %v82_v0, 0.0 }
  0x85   :  { %v99_v36 = vsel %vm98_vm0, %v96_v34, 0.0 }
  0x86   :  { %v93_v32 = vpop.permute.xlu1 %92 }
  0x87   :  { %vm95_vm6 = vcmp.eq.s32.totalorder %v87_v31, %v93_v32 }
  0x88   :  { %v97_v38 = vsel %vm95_vm6, %v83_v1, 0.0 }
  0x89   :  { %v102_v40 = vsel %vm98_vm0, %v97_v38, 0.0 }
  0x92   :  { %v109_v9 = vpop.xlane.xlu0 %108 }
  0x93   :  { %220 = vrsqrt.f32 %v109_v9  ;;  %vm115_vm1 = vcmp.eq.f32.partialorder %v109_v9, inf  ;;  %v118_v13 = vand.u32 2147483648, %v109_v9  ;;  %vm117_vm2 = vcmp.eq.f32.partialorder %v109_v9, 0.0 }
  0x96   :  { %v112_v10 = vpop.xlane.xlu0 %111 }
  0x97   :  { %222 = vrsqrt.f32 %v112_v10  ;;  %vm122_vm3 = vcmp.eq.f32.partialorder %v112_v10, inf  ;;  %v125_v19 = vand.u32 2147483648, %v112_v10  ;;  %vm124_vm4 = vcmp.eq.f32.partialorder %v112_v10, 0.0 }
  0x9d   :  { %v221_v11 = vpop.eup %220 }
  0x9e   :  { %v114_v12 = vmul.f32 %v221_v11, %v109_v9 }
  0xa0   :  { %v116_v14 = vsel %vm115_vm1, %v109_v9, %v114_v12 }
  0xa1   :  { %v223_v15 = vpop.eup %222  ;;  %v119_v16 = vsel %vm117_vm2, %v118_v13, %v116_v14 }
  0xa2   :  { %v131_v17 = vmax.f32 %v119_v16, 1e-12  ;;  %v121_v18 = vmul.f32 %v223_v15, %v112_v10  ;;  %v127_v42 = vmax.f32 %v119_v16, 1e-08 }
  0xa4   :  { %224 = vrcp.f32 %v131_v17  ;;  %v123_v20 = vsel %vm122_vm3, %v112_v10, %v121_v18 }
  0xa5   :  { %v126_v21 = vsel %vm124_vm4, %v125_v19, %v123_v20 }
  0xa6   :  { %v132_v22 = vmax.f32 %v126_v21, 1e-12  ;;  %v128_v44 = vmax.f32 %v126_v21, 1e-08 }
  0xa8   :  { %226 = vrcp.f32 %v132_v22 }
  0xae   :  { %v225_v23 = vpop.eup %224 }
  0xaf   :  { %v137_v24 = vmul.f32 %v225_v23, %v82_v0 }
  0xb1   :  { %v139_v25 = vmul.f32 1.442695, %v137_v24 }
  0xb2   :  { %v227_v26 = vpop.eup %226 }
  0xb3   :  { %228 = vpow2.f32 %v139_v25  ;;  %v138_v28 = vmul.f32 %v227_v26, %v83_v1 }
  0xb5   :  { %v141_v30 = vmul.f32 1.442695, %v138_v28 }
  0xb7   :  { %230 = vpow2.f32 %v141_v30 }
  0xbd   :  { %v229_v33 = vpop.eup %228 }
  0xbe   :  { %v143_v35 = vsel %vm98_vm0, %v229_v33, 0.0 }
  0xbf   :  { %144 = vadd.xlane.f32.xlu0 %v143_v35 }
  0xc1   :  { %v231_v37 = vpop.eup %230 }
  0xc2   :  { %v146_v39 = vsel %vm98_vm0, %v231_v37, 0.0 }
  0xc3   :  { %147 = vadd.xlane.f32.xlu1 %v146_v39  ;;  %100 = vadd.xlane.f32.xlu0 %v99_v36 }
  0xc7   :  { %103 = vadd.xlane.f32.xlu0 %v102_v40 }
 0x14c   :  { %v145_v43 = vpop.xlane.xlu0 %144 }
 0x14d   :  { %232 = vlog2.f32 %v145_v43 }
 0x14e   :  { %234 = vrcp.f32 %v127_v42 }
 0x14f   :  { %236 = vrcp.f32 %v128_v44 }
 0x150   :  { %v148_v45 = vpop.xlane.xlu1 %147  ;;  %v101_v46 = vpop.xlane.xlu0 %100 }
 0x151   :  { %238 = vlog2.f32 %v148_v45  ;;  %v153_v49 = vmul.f32 %v225_v23, %v101_v46 }
 0x154   :  { %v104_v51 = vpop.xlane.xlu0 %103 }
 0x155   :  { %v154_v58 = vmul.f32 %v227_v26, %v104_v51 }
 0x157   :  { %v233_v47 = vpop.eup %232 }
 0x158   :  { %v150_v48 = vmul.f32 0.6931472, %v233_v47  ;;  %v235_v50 = vpop.eup %234 }
 0x159   :  { %v237_v52 = vpop.eup %236  ;;  %v135_v56 = vmul.f32 %v235_v50, %v101_v46 }
 0x15a   :  { %v157_v53 = vsub.f32 %v150_v48, %v153_v49  ;;  %v136_v57 = vmul.f32 %v237_v52, %v104_v51 }
 0x15b   :  { %v239_v54 = vpop.eup %238  ;;  %v155_v61 = vsub.f32 1.0, %v135_v56 }
 0x15c   :  { %v152_v55 = vmul.f32 0.6931472, %v239_v54  ;;  %v159_v59 = vmul.f32 0.1, %v157_v53  ;;  %v156_v62 = vsub.f32 1.0, %v136_v57 }
 0x15e   :  { %v158_v60 = vsub.f32 %v152_v55, %v154_v58  ;;  %v161_v0 = vadd.f32 %v159_v59, %v155_v61 }
 0x160   :  { %v160_v63 = vmul.f32 0.1, %v158_v60 }
 0x162   :  { %v162_v1 = vadd.f32 %v160_v63, %v156_v62 }
 0x164   :  { %v164_v2 = vadd.f32 %v162_v1, %v161_v0 }
 0x166   :  { %v165_v3 = vrot.slane %v164_v2, 4 }
 0x168   :  { %v166_v4 = vadd.f32 %v165_v3, %v164_v2 }
 0x16a   :  { %v167_v5 = vrot.slane %v166_v4, 2 }
 0x16c   :  { %v168_v6 = vadd.f32 %v167_v5, %v166_v4 }
 0x16e   :  { %v169_v7 = vrot.slane %v168_v6, 1 }
 0x170   :  { %v170_v9 = vadd.f32 %v169_v7, %v168_v6 }
 0x172   :  { %v171_v10 = vadd.f32 %v170_v9, %v163_v8 }
 0x174   :  { %173 = vst.msk [vmem:[#allocation2] sm:$0x1] %vm80_vm7, %v171_v10 }
 0x17b   :  { %v214_v11 = vld [vmem:[#allocation2] ss:$0 sm:$0xff] }
 0x17c   :  { %184 = vperm.xlu0 %219, %v214_v11  }
 0x1fb   :  { %v185_v12 = vpop.permute.xlu0 %184 }
 0x1fc   :  { %187 = vst [vmem:[#allocation3] sm:$0xff] %v185_v12 }
 0x1fd   :  { %251 = shalt.err (!%p248_p4)
}
 0x1fe   :  { %s252_s20 = scalar_lea.hbm %s316_s2, 128 }
 0x1ff   :  { %p253_p5 = scmp.ne.s32.totalorder %s316_s2, %s252_s20  ;;  %p256_p6 = scmp.lt.u32.totalorder %s252_s20, %s316_s2 }
 0x201   :  { %p258_p7 = pnand %p256_p6, %p253_p5 }
 0x203   :  { %261 = shalt.err (!%p258_p7)
}
 0x204   :  { %197 = dma.vmem_to_hbm [thread:$0]  %s195_s1, 128, %s316_s2, [#allocation4]  }
 0x205   :  { %262 = dma.done.wait [#allocation4], 128  }
 0x206   :  { %263 = vsyncadd [#allocation4], 4294967168 }
 0x207   :  { %201 = vsyncpa [#allocation4], 1 }

</bundles_post_ra>
